<compile_context>
chip_gen: v5e
topology: v5e:2x2
jax: 0.10.0
libtpu: 0.0.40
codegen_flags: <defaults>
</compile_context>

<pallas_src>
import functools

import jax
import jax.numpy as jnp
from jax.experimental import pallas as pl
from jax.experimental.pallas import tpu as pltpu


def msa_kernel(x_ref, gamma_ref, beta_ref,
               w_qkv_ref, b_qkv_ref, wo_ref, bo_ref,
               out_ref, *attn_refs,
               num_heads: int, eps: float, need_weights: bool, mxu_dtype):
    # x_ref: (1, S, E) block for one batch element.
    x = x_ref[0]                                   # (S, E) f32
    S, E = x.shape
    Dh = E // num_heads

    # ---- Pre-LayerNorm (f32, eps inside rsqrt, biased variance) ----
    mean = jnp.mean(x, axis=-1, keepdims=True)
    cent = x - mean
    var = jnp.mean(cent * cent, axis=-1, keepdims=True)
    xn = cent * jax.lax.rsqrt(var + eps)
    xn = xn * gamma_ref[...] + beta_ref[...]       # gamma/beta are (1, E)

    # ---- Fused QKV projection: one wide MXU pass, f32 accumulation ----
    # 1/sqrt(Dh) is already folded into the Q slice of W/b by the wrapper.
    qkv = jnp.dot(xn.astype(mxu_dtype), w_qkv_ref[...],
                  preferred_element_type=jnp.float32) + b_qkv_ref[...]   # (S, 3E)

    q = qkv[:, :E]
    k = qkv[:, E:2 * E]
    v = qkv[:, 2 * E:]

    # ---- Head-batched attention (no per-head loop, no concatenate) ----
    def to_heads(t):                               # (S, E) -> (H, S, Dh)
        return jnp.transpose(t.reshape(S, num_heads, Dh), (1, 0, 2))

    qh = to_heads(q).astype(mxu_dtype)
    kh = to_heads(k).astype(mxu_dtype)
    vh = to_heads(v).astype(mxu_dtype)

    s = jnp.einsum('hqd,hkd->hqk', qh, kh,
                   preferred_element_type=jnp.float32)                   # (H, S, S)
    m = jnp.max(s, axis=-1, keepdims=True)
    p = jnp.exp(s - m)
    denom = jnp.sum(p, axis=-1, keepdims=True)
    p = p * pl.reciprocal(denom, approx=True)                            # softmax (f32)

    o_h = jnp.einsum('hqk,hkd->hqd', p.astype(mxu_dtype), vh,
                     preferred_element_type=jnp.float32)                 # (H, S, Dh)
    o = jnp.transpose(o_h, (1, 0, 2)).reshape(S, E)                      # merge heads

    # ---- Output projection ----
    out = jnp.dot(o.astype(mxu_dtype), wo_ref[...],
                  preferred_element_type=jnp.float32) + bo_ref[...]
    out_ref[0] = out.astype(out_ref.dtype)

    if need_weights:
        attn_refs[0][0] = (jnp.sum(p, axis=0) * (1.0 / num_heads)).astype(
            attn_refs[0].dtype)


def msa_block_forward(x, params, *, num_heads: int, eps: float = 1e-5,
                      need_weights: bool = True, mxu_dtype=jnp.bfloat16):
    """x: (B, S, E) float32. Returns (attn_output (B,S,E), attn_weights (B,S,S) or None)."""
    B, S, E = x.shape
    assert E % num_heads == 0
    Dh = E // num_heads
    scale = 1.0 / (float(Dh) ** 0.5)

    gamma = params["ln_gamma"].reshape(1, E).astype(jnp.float32)
    beta = params["ln_beta"].reshape(1, E).astype(jnp.float32)

    # PyTorch in_proj_weight is (3E, E) applied as x @ W.T; pre-transpose and
    # fuse Q/K/V into a single (E, 3E) weight and (1, 3E) bias.  Fold the
    # 1/sqrt(Dh) query scaling into the Q slice (constant prep in the wrapper,
    # fuses with the transpose/cast; removes an (S,E) multiply from the kernel).
    w_qkv_f32 = params["in_proj_weight"].T.astype(jnp.float32)            # (E, 3E)
    q_scale = jnp.concatenate(
        [jnp.full((1, E), scale, jnp.float32), jnp.ones((1, 2 * E), jnp.float32)],
        axis=1)                                                            # (1, 3E)
    w_qkv = (w_qkv_f32 * q_scale).astype(mxu_dtype)                        # (E, 3E) [q|k|v]
    b_qkv = (params["in_proj_bias"].reshape(1, 3 * E).astype(jnp.float32)
             * q_scale)                                                    # (1, 3E)
    wo = params["out_proj_weight"].T.astype(mxu_dtype)                     # (E, E)
    bo = params["out_proj_bias"].reshape(1, E).astype(jnp.float32)

    kernel = functools.partial(msa_kernel, num_heads=num_heads, eps=eps,
                               need_weights=need_weights, mxu_dtype=mxu_dtype)

    const2d = lambda shape: pl.BlockSpec(shape, lambda b: (0, 0))

    out_shapes = [jax.ShapeDtypeStruct((B, S, E), x.dtype)]
    out_specs = [pl.BlockSpec((1, S, E), lambda b: (b, 0, 0))]
    if need_weights:
        out_shapes.append(jax.ShapeDtypeStruct((B, S, S), x.dtype))
        out_specs.append(pl.BlockSpec((1, S, S), lambda b: (b, 0, 0)))

    result = pl.pallas_call(
        kernel,
        out_shape=tuple(out_shapes),
        grid_spec=pltpu.PrefetchScalarGridSpec(
            num_scalar_prefetch=0,
            grid=(B,),
            in_specs=[
                pl.BlockSpec((1, S, E), lambda b: (b, 0, 0)),  # x
                const2d((1, E)),                               # gamma
                const2d((1, E)),                               # beta
                const2d((E, 3 * E)),                           # fused W_qkv (q pre-scaled)
                const2d((1, 3 * E)),                           # fused b_qkv (q pre-scaled)
                const2d((E, E)),                               # W_out
                const2d((1, E)),                               # b_out
            ],
            out_specs=out_specs,
        ),
        compiler_params=pltpu.CompilerParams(
            dimension_semantics=("parallel",),
            vmem_limit_bytes=64 * 1024 * 1024,
        ),
    )(x, gamma, beta, w_qkv, b_qkv, wo, bo)

    if need_weights:
        return result
    return result[0], None


def msa_block_reference(x, params, *, num_heads: int, eps: float = 1e-5):
    """Pure-JAX reference matching PyTorch semantics (for sanity checking)."""
    B, S, E = x.shape
    Dh = E // num_heads
    mean = jnp.mean(x, axis=-1, keepdims=True)
    var = jnp.mean((x - mean) ** 2, axis=-1, keepdims=True)
    xn = (x - mean) / jnp.sqrt(var + eps)
    xn = xn * params["ln_gamma"] + params["ln_beta"]

    qkv = xn @ params["in_proj_weight"].T + params["in_proj_bias"]
    q, k, v = jnp.split(qkv, 3, axis=-1)

    def to_heads(t):
        return t.reshape(B, S, num_heads, Dh).transpose(0, 2, 1, 3)  # (B,H,S,Dh)

    qh, kh, vh = to_heads(q), to_heads(k), to_heads(v)
    scores = jnp.einsum("bhqd,bhkd->bhqk", qh, kh) / jnp.sqrt(Dh).astype(x.dtype)
    p = jax.nn.softmax(scores, axis=-1)
    oh = jnp.einsum("bhqk,bhkd->bhqd", p, vh)
    o = oh.transpose(0, 2, 1, 3).reshape(B, S, E)
    out = o @ params["out_proj_weight"].T + params["out_proj_bias"]
    return out, jnp.mean(p, axis=1)


def init_params(key, embedding_dim: int):
    E = embedding_dim
    k1, k2, k3 = jax.random.split(key, 3)
    return {
        "ln_gamma": jnp.ones((E,), jnp.float32),
        "ln_beta": jnp.zeros((E,), jnp.float32),
        "in_proj_weight": 0.05 * jax.random.normal(k1, (3 * E, E), jnp.float32),
        "in_proj_bias": 0.01 * jax.random.normal(k2, (3 * E,), jnp.float32),
        "out_proj_weight": 0.05 * jax.random.normal(k3, (E, E), jnp.float32),
        "out_proj_bias": jnp.zeros((E,), jnp.float32),
    }


if __name__ == "__main__":
    # Small shapes consistent with the module's forward: (batch, seq, embed)
    B, S, E, H = 2, 8, 32, 4

    key = jax.random.PRNGKey(0)
    kx, kp = jax.random.split(key)
    x = jax.random.normal(kx, (B, S, E), jnp.float32)
    params = init_params(kp, E)

    ref_out, ref_w = msa_block_reference(x, params, num_heads=H)

    # f32 MXU path: tight semantic check against the PyTorch/JAX reference.
    out32, w32 = msa_block_forward(x, params, num_heads=H, mxu_dtype=jnp.float32)
    out32 = jax.block_until_ready(out32)
    w32 = jax.block_until_ready(w32)
    assert out32.shape == (B, S, E) and w32.shape == (B, S, S)
    assert jnp.allclose(out32, ref_out, atol=2e-3, rtol=2e-3)
    assert jnp.allclose(w32, ref_w, atol=2e-3, rtol=2e-3)

    # Default bf16-MXU path (f32 accumulation): production configuration.
    out_bf, w_bf = msa_block_forward(x, params, num_heads=H)
    out_bf = jax.block_until_ready(out_bf)
    w_bf = jax.block_until_ready(w_bf)
    assert jnp.allclose(out_bf, ref_out, atol=3e-2, rtol=3e-2)
    assert jnp.allclose(w_bf, ref_w, atol=3e-2, rtol=3e-2)

    # need_weights=False path (skips the (B,S,S) HBM write).
    out_nw, w_nw = msa_block_forward(x, params, num_heads=H, need_weights=False)
    out_nw = jax.block_until_ready(out_nw)
    assert w_nw is None
    assert jnp.allclose(out_nw, ref_out, atol=3e-2, rtol=3e-2)

    print("KERNEL_OK")
</pallas_src>

<mosaic_0001>
module attributes {stable_mosaic.version = 11 : i64} {
  func.func @msa_kernel(%arg0: i32, %arg1: memref<1x8x32xf32, #tpu.memory_space<vmem>>, %arg2: memref<1x32xf32, #tpu.memory_space<vmem>>, %arg3: memref<1x32xf32, #tpu.memory_space<vmem>>, %arg4: memref<32x96xf32, #tpu.memory_space<vmem>>, %arg5: memref<1x96xf32, #tpu.memory_space<vmem>>, %arg6: memref<32x32xf32, #tpu.memory_space<vmem>>, %arg7: memref<1x32xf32, #tpu.memory_space<vmem>>, %arg8: memref<1x8x32xf32, #tpu.memory_space<vmem>>, %arg9: memref<1x8x8xf32, #tpu.memory_space<vmem>>) attributes {dimension_semantics = [#tpu.dimension_semantics<parallel>], iteration_bounds = array<i64: 2>, scalar_prefetch = 0 : i64, scratch_operands = 0 : i64, tpu.core_type = #tpu.core_type<tc>, window_params = [{transform_indices = @transform_0, window_bounds = array<i64: 1, 8, 32>}, {pipeline_mode = #tpu.pipeline_mode<synchronous>, transform_indices = @transform_1, window_bounds = array<i64: 1, 32>}, {pipeline_mode = #tpu.pipeline_mode<synchronous>, transform_indices = @transform_2, window_bounds = array<i64: 1, 32>}, {pipeline_mode = #tpu.pipeline_mode<synchronous>, transform_indices = @transform_3, window_bounds = array<i64: 32, 96>}, {pipeline_mode = #tpu.pipeline_mode<synchronous>, transform_indices = @transform_4, window_bounds = array<i64: 1, 96>}, {pipeline_mode = #tpu.pipeline_mode<synchronous>, transform_indices = @transform_5, window_bounds = array<i64: 32, 32>}, {pipeline_mode = #tpu.pipeline_mode<synchronous>, transform_indices = @transform_6, window_bounds = array<i64: 1, 32>}, {transform_indices = @transform_7, window_bounds = array<i64: 1, 8, 32>}, {transform_indices = @transform_8, window_bounds = array<i64: 1, 8, 8>}]} {
    %c0 = arith.constant 0 : index
    %c0_0 = arith.constant 0 : index
    %c0_1 = arith.constant 0 : index
    %0 = vector.load %arg1[%c0, %c0_0, %c0_1] : memref<1x8x32xf32, #tpu.memory_space<vmem>>, vector<1x8x32xf32>
    %1 = vector.shape_cast %0 : vector<1x8x32xf32> to vector<8x32xf32>
    %cst = arith.constant dense<0.000000e+00> : vector<8xf32>
    %2 = vector.multi_reduction <add>, %1, %cst [1] : vector<8x32xf32> to vector<8xf32>
    %3 = vector.shape_cast %2 : vector<8xf32> to vector<8x1xf32>
    %cst_2 = arith.constant 3.200000e+01 : f32
    %4 = vector.broadcast %cst_2 : f32 to vector<8x1xf32>
    %5 = arith.divf %3, %4 : vector<8x1xf32>
    %6 = vector.broadcast %5 : vector<8x1xf32> to vector<8x32xf32>
    %7 = arith.subf %1, %6 : vector<8x32xf32>
    %8 = arith.mulf %7, %7 : vector<8x32xf32>
    %cst_3 = arith.constant dense<0.000000e+00> : vector<8xf32>
    %9 = vector.multi_reduction <add>, %8, %cst_3 [1] : vector<8x32xf32> to vector<8xf32>
    %10 = vector.shape_cast %9 : vector<8xf32> to vector<8x1xf32>
    %cst_4 = arith.constant 3.200000e+01 : f32
    %11 = vector.broadcast %cst_4 : f32 to vector<8x1xf32>
    %12 = arith.divf %10, %11 : vector<8x1xf32>
    %cst_5 = arith.constant 9.99999974E-6 : f32
    %13 = vector.broadcast %cst_5 : f32 to vector<8x1xf32>
    %14 = arith.addf %12, %13 : vector<8x1xf32>
    %15 = math.rsqrt %14 : vector<8x1xf32>
    %16 = vector.broadcast %15 : vector<8x1xf32> to vector<8x32xf32>
    %17 = arith.mulf %7, %16 : vector<8x32xf32>
    %c0_6 = arith.constant 0 : index
    %c0_7 = arith.constant 0 : index
    %18 = vector.load %arg2[%c0_6, %c0_7] : memref<1x32xf32, #tpu.memory_space<vmem>>, vector<1x32xf32>
    %19 = vector.broadcast %18 : vector<1x32xf32> to vector<8x32xf32>
    %20 = arith.mulf %17, %19 : vector<8x32xf32>
    %c0_8 = arith.constant 0 : index
    %c0_9 = arith.constant 0 : index
    %21 = vector.load %arg3[%c0_8, %c0_9] : memref<1x32xf32, #tpu.memory_space<vmem>>, vector<1x32xf32>
    %22 = vector.broadcast %21 : vector<1x32xf32> to vector<8x32xf32>
    %23 = arith.addf %20, %22 : vector<8x32xf32>
    %c0_10 = arith.constant 0 : index
    %c0_11 = arith.constant 0 : index
    %24 = vector.load %arg4[%c0_10, %c0_11] : memref<32x96xf32, #tpu.memory_space<vmem>>, vector<32x96xf32>
    %cst_12 = arith.constant dense<0.000000e+00> : vector<8x96xf32>
    %25 = tpu.matmul %23, %24, %cst_12 {dimension_numbers = #tpu.dot_dimension_numbers<[1], [0], [0], [1], [0, 0, 1, 1], [], []>} : vector<8x32xf32>, vector<32x96xf32>, vector<8x96xf32> -> vector<8x96xf32>
    %c0_13 = arith.constant 0 : index
    %c0_14 = arith.constant 0 : index
    %26 = vector.load %arg5[%c0_13, %c0_14] : memref<1x96xf32, #tpu.memory_space<vmem>>, vector<1x96xf32>
    %27 = vector.broadcast %26 : vector<1x96xf32> to vector<8x96xf32>
    %28 = arith.addf %25, %27 : vector<8x96xf32>
    %29 = vector.extract_strided_slice %28 {offsets = [0, 0], sizes = [8, 32], strides = [1, 1]} : vector<8x96xf32> to vector<8x32xf32>
    %30 = vector.extract_strided_slice %28 {offsets = [0, 32], sizes = [8, 32], strides = [1, 1]} : vector<8x96xf32> to vector<8x32xf32>
    %31 = vector.extract_strided_slice %28 {offsets = [0, 64], sizes = [8, 32], strides = [1, 1]} : vector<8x96xf32> to vector<8x32xf32>
    %32 = vector.shape_cast %29 : vector<8x32xf32> to vector<8x4x8xf32>
    %33 = tpu.transpose %32, [1, 0, 2] : vector<8x4x8xf32> -> vector<4x8x8xf32>
    %34 = vector.shape_cast %30 : vector<8x32xf32> to vector<8x4x8xf32>
    %35 = tpu.transpose %34, [1, 0, 2] : vector<8x4x8xf32> -> vector<4x8x8xf32>
    %36 = vector.shape_cast %31 : vector<8x32xf32> to vector<8x4x8xf32>
    %37 = tpu.transpose %36, [1, 0, 2] : vector<8x4x8xf32> -> vector<4x8x8xf32>
    "tpu.trace_start"() <{level = 10 : i32, message = "hqd,hkd->hqk"}> : () -> ()
    %cst_15 = arith.constant dense<0.000000e+00> : vector<4x8x8xf32>
    %38 = tpu.matmul %33, %35, %cst_15 {dimension_numbers = #tpu.dot_dimension_numbers<[2], [2], [1], [1], [0, 0, 0, 1, 1, 1], [0], [0]>} : vector<4x8x8xf32>, vector<4x8x8xf32>, vector<4x8x8xf32> -> vector<4x8x8xf32>
    "tpu.trace_stop"() : () -> ()
    %cst_16 = arith.constant dense<0xFF800000> : vector<4x8xf32>
    %39 = vector.multi_reduction <maximumf>, %38, %cst_16 [2] : vector<4x8x8xf32> to vector<4x8xf32>
    %40 = vector.shape_cast %39 : vector<4x8xf32> to vector<4x8x1xf32>
    %41 = vector.broadcast %40 : vector<4x8x1xf32> to vector<4x8x8xf32>
    %42 = arith.subf %38, %41 : vector<4x8x8xf32>
    %43 = math.exp %42 : vector<4x8x8xf32>
    %cst_17 = arith.constant dense<0.000000e+00> : vector<4x8xf32>
    %44 = vector.multi_reduction <add>, %43, %cst_17 [2] : vector<4x8x8xf32> to vector<4x8xf32>
    %45 = vector.shape_cast %44 : vector<4x8xf32> to vector<4x8x1xf32>
    %46 = tpu.reciprocal %45 {approx = true} : vector<4x8x1xf32> -> vector<4x8x1xf32>
    %47 = vector.broadcast %46 : vector<4x8x1xf32> to vector<4x8x8xf32>
    %48 = arith.mulf %43, %47 : vector<4x8x8xf32>
    "tpu.trace_start"() <{level = 10 : i32, message = "hqk,hkd->hqd"}> : () -> ()
    %cst_18 = arith.constant dense<0.000000e+00> : vector<4x8x8xf32>
    %49 = tpu.matmul %48, %37, %cst_18 {dimension_numbers = #tpu.dot_dimension_numbers<[2], [1], [1], [2], [0, 0, 0, 1, 1, 2], [0], [0]>} : vector<4x8x8xf32>, vector<4x8x8xf32>, vector<4x8x8xf32> -> vector<4x8x8xf32>
    "tpu.trace_stop"() : () -> ()
    %50 = tpu.transpose %49, [1, 0, 2] : vector<4x8x8xf32> -> vector<8x4x8xf32>
    %51 = vector.shape_cast %50 : vector<8x4x8xf32> to vector<8x32xf32>
    %c0_19 = arith.constant 0 : index
    %c0_20 = arith.constant 0 : index
    %52 = vector.load %arg6[%c0_19, %c0_20] : memref<32x32xf32, #tpu.memory_space<vmem>>, vector<32x32xf32>
    %cst_21 = arith.constant dense<0.000000e+00> : vector<8x32xf32>
    %53 = tpu.matmul %51, %52, %cst_21 {dimension_numbers = #tpu.dot_dimension_numbers<[1], [0], [0], [1], [0, 0, 1, 1], [], []>} : vector<8x32xf32>, vector<32x32xf32>, vector<8x32xf32> -> vector<8x32xf32>
    %c0_22 = arith.constant 0 : index
    %c0_23 = arith.constant 0 : index
    %54 = vector.load %arg7[%c0_22, %c0_23] : memref<1x32xf32, #tpu.memory_space<vmem>>, vector<1x32xf32>
    %55 = vector.broadcast %54 : vector<1x32xf32> to vector<8x32xf32>
    %56 = arith.addf %53, %55 : vector<8x32xf32>
    %c0_24 = arith.constant 0 : index
    %c0_25 = arith.constant 0 : index
    %c0_26 = arith.constant 0 : index
    %57 = vector.load %arg8[%c0_24, %c0_25, %c0_26] : memref<1x8x32xf32, #tpu.memory_space<vmem>>, vector<1x8x32xf32>
    %58 = vector.shape_cast %57 : vector<1x8x32xf32> to vector<8x32xf32>
    %59 = vector.shape_cast %56 : vector<8x32xf32> to vector<1x8x32xf32>
    tpu.vector_store %arg8[%c0_24, %c0_25, %c0_26], %59 {strides = array<i32>} : memref<1x8x32xf32, #tpu.memory_space<vmem>>, vector<1x8x32xf32>,
    %cst_27 = arith.constant dense<0.000000e+00> : vector<8x8xf32>
    %60 = vector.multi_reduction <add>, %48, %cst_27 [0] : vector<4x8x8xf32> to vector<8x8xf32>
    %cst_28 = arith.constant 2.500000e-01 : f32
    %61 = vector.broadcast %cst_28 : f32 to vector<8x8xf32>
    %62 = arith.mulf %60, %61 : vector<8x8xf32>
    %c0_29 = arith.constant 0 : index
    %c0_30 = arith.constant 0 : index
    %c0_31 = arith.constant 0 : index
    %63 = vector.load %arg9[%c0_29, %c0_30, %c0_31] : memref<1x8x8xf32, #tpu.memory_space<vmem>>, vector<1x8x8xf32>
    %64 = vector.shape_cast %63 : vector<1x8x8xf32> to vector<8x8xf32>
    %65 = vector.shape_cast %62 : vector<8x8xf32> to vector<1x8x8xf32>
    tpu.vector_store %arg9[%c0_29, %c0_30, %c0_31], %65 {strides = array<i32>} : memref<1x8x8xf32, #tpu.memory_space<vmem>>, vector<1x8x8xf32>,
    return
  }
  func.func @transform_0(%arg0: i32) -> (i32, i32, i32) {
    %c0_i32 = arith.constant 0 : i32
    %c0_i32_0 = arith.constant 0 : i32
    %c0_i32_1 = arith.constant 0 : i32
    return %arg0, %c0_i32, %c0_i32_0 : i32, i32, i32
  }
  func.func @transform_1(%arg0: i32) -> (i32, i32) {
    %c0_i32 = arith.constant 0 : i32
    %c0_i32_0 = arith.constant 0 : i32
    %c0_i32_1 = arith.constant 0 : i32
    return %c0_i32, %c0_i32_0 : i32, i32
  }
  func.func @transform_2(%arg0: i32) -> (i32, i32) {
    %c0_i32 = arith.constant 0 : i32
    %c0_i32_0 = arith.constant 0 : i32
    %c0_i32_1 = arith.constant 0 : i32
    return %c0_i32, %c0_i32_0 : i32, i32
  }
  func.func @transform_3(%arg0: i32) -> (i32, i32) {
    %c0_i32 = arith.constant 0 : i32
    %c0_i32_0 = arith.constant 0 : i32
    %c0_i32_1 = arith.constant 0 : i32
    return %c0_i32, %c0_i32_0 : i32, i32
  }
  func.func @transform_4(%arg0: i32) -> (i32, i32) {
    %c0_i32 = arith.constant 0 : i32
    %c0_i32_0 = arith.constant 0 : i32
    %c0_i32_1 = arith.constant 0 : i32
    return %c0_i32, %c0_i32_0 : i32, i32
  }
  func.func @transform_5(%arg0: i32) -> (i32, i32) {
    %c0_i32 = arith.constant 0 : i32
    %c0_i32_0 = arith.constant 0 : i32
    %c0_i32_1 = arith.constant 0 : i32
    return %c0_i32, %c0_i32_0 : i32, i32
  }
  func.func @transform_6(%arg0: i32) -> (i32, i32) {
    %c0_i32 = arith.constant 0 : i32
    %c0_i32_0 = arith.constant 0 : i32
    %c0_i32_1 = arith.constant 0 : i32
    return %c0_i32, %c0_i32_0 : i32, i32
  }
  func.func @transform_7(%arg0: i32) -> (i32, i32, i32) {
    %c0_i32 = arith.constant 0 : i32
    %c0_i32_0 = arith.constant 0 : i32
    %c0_i32_1 = arith.constant 0 : i32
    return %arg0, %c0_i32, %c0_i32_0 : i32, i32, i32
  }
  func.func @transform_8(%arg0: i32) -> (i32, i32, i32) {
    %c0_i32 = arith.constant 0 : i32
    %c0_i32_0 = arith.constant 0 : i32
    %c0_i32_1 = arith.constant 0 : i32
    return %arg0, %c0_i32, %c0_i32_0 : i32, i32, i32
  }
}

</mosaic_0001>

<bundles_post_ra>
// kernel: tpu_custom_call.1
= control target key start
LH: loop header
LB: loop body
LE: loop exit
PB: predicated region body
PF: predicated region fallthrough
CT: control target
= control target key end

     0   :  { %s2276_s0 = inlined_call_operand.hbm [shape: f32[2,8,32], index: 0, kind: input, shape index: {}]   ;;  %s2277_s1 = inlined_call_operand.hbm [shape: f32[1,32], index: 1, kind: input, shape index: {}]   ;;  %s2278_s2 = inlined_call_operand.vmem [shape: f32[1,32], index: 2, kind: input, shape index: {}]   ;;  %s2279_s3 = inlined_call_operand.hbm [shape: f32[32,96], index: 3, kind: input, shape index: {}]   ;;  %s2280_s4 = inlined_call_operand.vmem [shape: f32[1,96], index: 4, kind: input, shape index: {}]   ;;  %s2281_s5 = inlined_call_operand.hbm [shape: f32[32,32], index: 5, kind: input, shape index: {}]   ;;  %s2282_s6 = inlined_call_operand.vmem [shape: f32[1,32], index: 6, kind: input, shape index: {}]   ;;  %s2283_s7 = inlined_call_operand.hbm [shape: f32[2,8,32], index: 7, kind: output, shape index: {0}]   ;;  %s2284_s8 = inlined_call_operand.hbm [shape: f32[2,8,8], index: 8, kind: output, shape index: {1}]  }
   0x1   :  { %2285 = sst [smem:[#allocation18_spill]] %s2277_s1 }
   0x2   :  { %2286 = sst [smem:[#allocation19_spill]] %s2279_s3 }
   0x3   :  { %14 = vsyncpa [#allocation3], 0 }
   0x4   :  { %16 = vsyncpa [#allocation3 + $0x1], 0 }
   0x5   :  { %17 = vsyncpa [#allocation6], 0 }
   0x6   :  { %18 = vsyncpa [#allocation9], 0 }
   0x7   :  { %19 = vsyncpa [#allocation4], 0 }
   0x8   :  { %21 = vsyncpa [#allocation4 + $0x1], 0 }
   0x9   :  { %22 = vsyncpa [#allocation12], 0 }
   0xa   :  { %24 = vsyncpa [#allocation12 + $0x1], 0  ;;  %s1848_s27 = smov 0   ;;  %s1850_s28 = smov 0  }
   0xb   :  { %s1852_s29 = smov 0   ;;  %s1854_s30 = smov 0  }
   0xc LB: > { %s1869_s9 = sadd.s32 4294967295, %s1785_s30   ;;  %s1395_s10 = sadd.s32 4294967294, %s1785_s30   ;;  %s1785_s30 = sphi %s1854_s30, %s2299_s30   ;;  %s1781_s29 = sphi %s1852_s29, %s2298_s29   ;;  %s1777_s28 = sphi %s1850_s28, %s2297_s28   ;;  %s1773_s27 = sphi %s1848_s27, %s2296_s27  }
   0xd   : > { %p50_p0 = scmp.ne.s32.totalorder %s1777_s28, %s1773_s27  ;;  %p51_p1 = scmp.eq.s32.totalorder %s1869_s9, 0 }
   0xe   : > { %p200_p2 = scmp.eq.s32.totalorder %s1869_s9, 1  ;;  %p206_p3 = scmp.eq.s32.totalorder %s1395_s10, 1 }
   0xf   : > { %p1878_p4 = por %p51_p1, %p50_p0  ;;  %p1396_p5 = scmp.ge.s32.totalorder %s1785_s30, 1 }
  0x10   : > { %p1883_p6 = por %p206_p3, %p50_p0  ;;  %p239_p7 = scmp.lt.s32.totalorder %s1785_s30, 3 }
  0x11   : > { %s2289_s1 = sld [smem:[#allocation18_spill]]  ;;  %s1787_s17 = smov [#allocation5]  }
  0x12   : > { %p1891_p8 = pnand %p1396_p5, %p239_p7  ;;  %s253_s18 = sshll.u32 %s1787_s17, 4  ;;  %s254_s18 = int_to_ptr.vmem [resolvable:$true] %s253_s18 }
  0x13   : > { %s2291_s3 = sld [smem:[#allocation19_spill]]  ;;  %s1788_s23 = smov [#allocation7]  }
  0x14   : > { %p1448_p10 = pneg %p1891_p8  ;;  %s267_s24 = sshll.u32 %s1788_s23, 4  ;;  %s268_s24 = int_to_ptr.vmem [resolvable:$true] %s267_s24 }
  0x15   : > { %s1789_s25 = smov 128   ;;  %s1790_s26 = smov 8  }
  0x16   : > { %p1903_p11 = pnand %p1448_p10, %p51_p1  ;;  %s282_s14 = sshll.u32 %s2281_s5, 4  ;;  %s283_s14 = int_to_ptr.hbm [resolvable:$true] %s282_s14 }
  0x17   : > { %s251_s15 = sshll.u32 %s2289_s1, 4  ;;  %s1791_s17 = smov [#allocation8]   ;;  %s252_s15 = int_to_ptr.hbm [resolvable:$true] %s251_s15 }
  0x18   : > { %1451 = dma.hbm_to_vmem [thread:$0]  (!%p1903_p11), %s252_s15, 16, %s254_s18, [#allocation6]  }
  0x19   : > { %s265_s21 = sshll.u32 %s2291_s3, 4  ;;  %s284_s19 = sshll.u32 %s1791_s17, 4  ;;  %s266_s21 = int_to_ptr.hbm [resolvable:$true] %s265_s21  ;;  %s285_s19 = int_to_ptr.vmem [resolvable:$true] %s284_s19 }
  0x1a   : > { %1454 = dma.hbm_to_vmem [thread:$0]  (!%p1903_p11), %s266_s21, 512, %s268_s24, [#allocation6], %s1789_s25, %s1789_s25, %s1790_s26  }
  0x1b   : > { %1457 = dma.hbm_to_vmem [thread:$0]  (!%p1903_p11), %s283_s14, 512, %s285_s19, [#allocation9], %s1789_s25, %s1789_s25, %s1790_s26  }
  0x1c   : > { %s1917_s15 = sadd.s32 1, %s1785_s30   ;;  %s37_s20 = sadd.s32 1, %s1781_s29 }
  0x1d   : > { %s34_s18 = ssub.s32 %s1785_s30, %s1917_s15  ;;  %p44_p13 = scmp.ne.s32.totalorder %s1781_s29, %s1777_s28 }
  0x1e   : > { %p35_p12 = scmp.eq.s32.totalorder %s34_s18, 0  ;;  %p45_p0 = scmp.eq.s32.totalorder %s1785_s30, 0 }
  0x1f   : > { %p1930_p3 = por %p200_p2, %p44_p13  ;;  %p1472_p5 = scmp.lt.s32.totalorder %s1785_s30, 2 }
  0x20   : > { %s1926_s21 = scalar_select %p35_p12, %s1781_s29, %s37_s20  }
  0x21   : > { %s301_s24 = sand.u32 1, %s1781_s29   ;;  %s1402_s10 = sshll.u32 %s1785_s30, 3 }
  0x22   : > { %p46_p7 = por %p45_p0, %p44_p13  ;;  %s1401_s22 = sshll.u32 %s301_s24, 3 }
  0x23   : > { %s309_s13 = scalar_lea.hbm %s2276_s0, %s1402_s10  ;;  %s305_s17 = scalar_lea.vmem [#allocation2], %s1401_s22 }
  0x24   : > { %s311_s14 = sshll.u32 %s309_s13, 4  ;;  %s313_s19 = sshll.u32 %s305_s17, 4  ;;  %s312_s14 = int_to_ptr.hbm [resolvable:$true] %s311_s14  ;;  %s314_s19 = int_to_ptr.vmem [resolvable:$true] %s313_s19 }
  0x25   : > { %p1940_p10 = pnand %p1472_p5, %p46_p7  ;;  %s302_s20 = scalar_lea.sflag [#allocation3], %s301_s24 }
  0x26   : > { %s1649_s1 = sshra.s32 %s312_s14, 4  ;;  %s1656_s22 = scalar_lea.hbm %s2276_s0, 16  ;;  %s1650_s1 = int_to_ptr.hbm [resolvable:$true] %s1649_s1 }
  0x27   : > { %s1651_s3 = scalar_lea.hbm %s1650_s1, 8  ;;  %p1653_p11 = pneg %p1940_p10 }
  0x28   : > { %p1652_p2 = scmp.ne.s32.totalorder %s1650_s1, %s1651_s3  ;;  %p1657_p0 = scmp.lt.s32.totalorder %s1650_s1, %s2276_s0 }
  0x29   : > { %p1658_p5 = scmp.lt.s32.totalorder %s1656_s22, %s1651_s3 }
  0x2a   : > { %p1654_p12 = pnand %p1653_p11, %p1652_p2 }
  0x2b   : > { %p1659_p7 = por %p1658_p5, %p1657_p0 }
  0x2c   : > { %p1655_p13 = pneg %p1654_p12 }
  0x2e   : > { %p1660_p9 = pnand %p1659_p7, %p1655_p13 }
  0x30   : > { %1663 = shalt.err (!%p1660_p9)
}
  0x31   : > { %1461 = dma.hbm_to_vmem [thread:$0]  (!%p1940_p10), %s312_s14, 128, %s314_s19, %s302_s20  }
  0x32   : > { %322 = sbr.rel (%p1891_p8) target bundleno = 1517 (0x5ed), region = 48  ;;  %s1957_s24 = sand.u32 (!%p1891_p8), 1, %s1777_s28  }
  0x33   : > { %s1960_s17 = sshll.u32 (!%p1891_p8), %s1957_s24, 3  ;;  %s325_s1 = scalar_lea.sflag (!%p1891_p8), [#allocation3], %s1957_s24 }
  0x34   : > { %s328_s3 = scalar_lea.vmem (!%p1891_p8), [#allocation2], %s1960_s17 }
  0x37   : > { %1752 = dma.done.wait (%p1878_p4), %s325_s1, 128  }
  0x38   : > { %1754 = vsyncadd (%p1878_p4), %s325_s1, 4294967168 }
  0x39   : > { %1756 = dma.done.wait (%p51_p1), [#allocation6], 528  }
  0x3a   : > { %1758 = vsyncadd (%p51_p1), [#allocation6], 4294966768 }
  0x3b   : > { %1760 = dma.done.wait (%p51_p1), [#allocation9], 512  }
  0x3c   : > { %1762 = vsyncadd (%p51_p1), [#allocation9], 4294966784  ;;  %vm383_vm0 = vcmask 261120   ;;  %v382_v0 = vld [vmem:[%s328_s3] sm:$0xff]  ;;  %v1792_v2 = vmov 32.0   ;;  %v423_v17 = vld [vmem:[#allocation7] sm:$0xff] }
  0x3d   : > { %v384_v1 = vsel %vm383_vm0, %v382_v0, 0.0  ;;  %1539 = vrcp.f32 %v1792_v2  ;;  %v426_v14 = vld [vmem:[#allocation7 + $0x18] sm:$0xff]  ;;  %v425_v15 = vld [vmem:[#allocation7 + $0x10] sm:$0xff]  ;;  %v424_v16 = vld [vmem:[#allocation7 + $0x8] sm:$0xff]  ;;  %s1793_s18 = smov 96   ;;  %s1794_s20 = smov 120  }
  0x3e   : > { %385 = vadd.xlane.f32.xlu0 %v384_v1  ;;  %446 = vmatpush.msra.mxu0 %v426_v14  ;;  %v1535_v27 = vld [vmem:[#allocation5] ss:$0 sm:$0xff]  ;;  %v1536_v30 = vld [vmem:[%s2278_s2] ss:$0 sm:$0xff]  ;;  %s1795_s10 = smov 112   ;;  %s1796_s25 = smov 104  }
  0x3f   : > { %v1537_v33 = vld [vmem:[%s2280_s4] ss:$0 sm:$0xff]  ;;  %v1797_v39 = vmov 1983009808   ;;  %vm465_vm5 = vcmask 1047556   ;;  %vm819_vm6 = vcmask 64512  }
  0x40   : > { %447 = vmatpush.msra.mxu0 %v425_v15  ;;  %v470_v40 = vunpack.c.l.s4 %v1797_v39  ;;  %v1798_v50 = vmov 1934713408   ;;  %s1799_s22 = smov 64   ;;  %s381_s26 = scalar_lea.vmem [#allocation11], %s1960_s17  ;;  %vm1183_vm7 = vcmask 130048   ;;  %vm1185_vm8 = vcmask 195584  }
  0x41   : > { %v494_v51 = vunpack.c.l.s4 %v1798_v50  ;;  %s1800_s13 = smov 16   ;;  %s1801_s1 = smov 8  }
  0x42   : > { %448 = vmatpush.msra.mxu0 %v424_v16  ;;  %v2001_v42 = vunpack.c.0.s8 %v470_v40  ;;  %s1802_s3 = smov 24   ;;  %s1426_s11 = sshll.u32 %s1869_s9, 3 }
  0x43   : > { %v1540_v3 = vpop.eup %1539  ;;  %v2017_v56 = vunpack.c.0.s8 %v494_v51  ;;  %s1258_s19 = scalar_lea.hbm %s2284_s8, %s1426_s11  ;;  %s1699_s9 = scalar_lea.hbm %s2284_s8, 16 }
  0x44   : > { %v388_v4 = vmul.f32 32.0, %v1540_v3  ;;  %vm392_vm1 = vweird.f32 %v1540_v3  ;;  %449 = vmatpush.msra.mxu0 %v423_v17 }
  0x46   : > { %v389_v5 = vsub.f32 1.0, %v388_v4 }
  0x48   : > { %v390_v6 = vmul.f32 %v1540_v3, %v389_v5 }
  0x4a   : > { %v391_v7 = vadd.f32 %v1540_v3, %v390_v6 }
  0x4c   : > { %v393_v8 = vsel %vm392_vm1, %v1540_v3, %v391_v7 }
  0xb1   : > { %v386_v9 = vpop.xlane.xlu0 %385 }
  0xb2   : > { %v394_v10 = vmul.f32 %v393_v8, %v386_v9 }
  0xb4   : > { %v395_v11 = vsub.f32 %v382_v0, %v394_v10 }
  0xb6   : > { %v396_v12 = vmul.f32 %v395_v11, %v395_v11 }
  0xb8   : > { %v397_v13 = vsel %vm383_vm0, %v396_v12, 0.0 }
  0xb9   : > { %398 = vadd.xlane.f32.xlu0 %v397_v13 }
 0x12c   : > { %v399_v18 = vpop.xlane.xlu0 %398 }
 0x12d   : > { %v400_v19 = vmul.f32 %v399_v18, %v393_v8 }
 0x12f   : > { %v401_v20 = vadd.f32 1e-05, %v400_v19 }
 0x131   : > { %1541 = vrsqrt.f32 %v401_v20  ;;  %vm408_vm3 = vweird.f32 %v401_v20 }
 0x137   : > { %v1542_v21 = vpop.eup %1541 }
 0x138   : > { %v403_v22 = vmul.f32 %v1542_v21, %v401_v20  ;;  %vm409_vm2 = vweird.f32 %v1542_v21 }
 0x139   : > { %vm410_vm4 = vmor %vm408_vm3, %vm409_vm2 }
 0x13a   : > { %v404_v23 = vmul.f32 %v1542_v21, %v403_v22 }
 0x13c   : > { %v405_v24 = vmul.f32 0.5, %v404_v23 }
 0x13e   : > { %v406_v25 = vsub.f32 1.5, %v405_v24 }
 0x140   : > { %v407_v26 = vmul.f32 %v1542_v21, %v406_v25 }
 0x142   : > { %v411_v28 = vsel %vm410_vm4, %v1542_v21, %v407_v26 }
 0x143   : > { %v412_v29 = vmul.f32 %v411_v28, %v395_v11 }
 0x145   : > { %v417_v31 = vmul.f32 %v1535_v27, %v412_v29 }
 0x147   : > { %v422_v32 = vadd.f32 %v1536_v30, %v417_v31 }
 0x149   : > { %1410 = vmatmul.msk.f32.vlgmr.msra.gmra.mxu0 %vm383_vm0, %v422_v32 }
 0x1c6   : > { %v451_v34 = vpop.f32.mrf.mxu0 }
 0x1c7   : > { %v1985_v35 = vadd.f32 %v1537_v33, %v451_v34 }
 0x1c9   : > { %575 = vrot.lane.b32.xlu0 %v1985_v35, %s1793_s18  ;;  %455 = vrot.lane.b32.xlu2 %v1985_v35, %s1794_s20  ;;  %v467_v41 = vrot.slane %v1985_v35, 4  ;;  %s1262_s20 = sshll.u32 %s1258_s19, 4  ;;  %s1263_s20 = int_to_ptr.hbm [resolvable:$true] %s1262_s20 }
 0x1ca   : > { %458 = vrot.lane.b32.xlu1 %v1985_v35, %s1795_s10  ;;  %s1234_s10 = scalar_lea.sflag [#allocation12], %s1957_s24 }
 0x1d2   : > { %461 = vrot.lane.b32.xlu1 %v1985_v35, %s1796_s25  ;;  %s1693_s25 = sshra.s32 %s1263_s20, 4  ;;  %s1694_s25 = int_to_ptr.hbm [resolvable:$true] %s1693_s25 }
 0x1d3   : > { %p1700_p9 = scmp.lt.s32.totalorder %s1694_s25, %s2284_s8 }
 0x223   : > { %v1994_v37 = vpop.permute.xlu2 %455 }
 0x224   : > { %v479_v43 = vrot.slane %v1994_v37, 4 }
 0x23b   : > { %v576_v2 = vpop.permute.xlu0 %575 }
 0x23c   : > { %v1991_v36 = vpop.permute.xlu1 %458  ;;  %v589_v7 = vrot.slane %v576_v2, 4 }
 0x23d   : > { %579 = vrot.lane.b32.xlu2 %v1991_v36, %s1793_s18  ;;  %v464_v44 = vrot.slane %v1991_v36, 4  ;;  %v468_v45 = vsel %vm465_vm5, %v1991_v36, %v467_v41 }
 0x23e   : > { %v476_v48 = vperm.slane %v468_v45, %v2001_v42 }
 0x23f   : > { %v466_v49 = vsel %vm465_vm5, %v464_v44, %v1985_v35 }
 0x240   : > { %v472_v54 = vperm.slane %v466_v49, %v2001_v42  ;;  %v503_v55 = vrot.slane %v476_v48, 4 }
 0x242   : > { %v491_v60 = vrot.slane %v472_v54, 4 }
 0x244   : > { %v1996_v38 = vpop.permute.xlu1 %461 }
 0x245   : > { %577 = vrot.lane.b32.xlu2 %v1994_v37, %s1793_s18  ;;  %581 = vrot.lane.b32.xlu1 %v1996_v38, %s1793_s18  ;;  %v477_v46 = vrot.slane %v1996_v38, 4  ;;  %v480_v47 = vsel %vm465_vm5, %v1996_v38, %v479_v43  ;;  %s1260_s18 = sshll.u32 %s381_s26, 4  ;;  %s1261_s18 = int_to_ptr.vmem [resolvable:$true] %s1260_s18 }
 0x246   : > { %v488_v52 = vperm.slane %v480_v47, %v2001_v42 }
 0x247   : > { %v478_v53 = vsel %vm465_vm5, %v477_v46, %v1994_v37 }
 0x248   : > { %v484_v57 = vperm.slane %v478_v53, %v2001_v42  ;;  %v504_v58 = vsel %vm465_vm5, %v488_v52, %v503_v55  ;;  %v501_v59 = vrot.slane %v488_v52, 4 }
 0x249   : > { %v512_v61 = vperm.slane %v504_v58, %v2017_v56 }
 0x24a   : > { %v489_v63 = vrot.slane %v484_v57, 4  ;;  %v492_v0 = vsel %vm465_vm5, %v484_v57, %v491_v60  ;;  %v502_v1 = vsel %vm465_vm5, %v501_v59, %v476_v48 }
 0x24b   : > { %v500_v3 = vperm.slane %v492_v0, %v2017_v56  ;;  %v519_v4 = vrot.slane %v512_v61, 4  ;;  %v508_v6 = vperm.slane %v502_v1, %v2017_v56 }
 0x24c   : > { %v490_v5 = vsel %vm465_vm5, %v489_v63, %v472_v54 }
 0x24d   : > { %v496_v9 = vperm.slane %v490_v5, %v2017_v56  ;;  %v515_v10 = vrot.slane %v500_v3, 4  ;;  %v520_v11 = vsel %vm465_vm5, 0.0, %v519_v4  ;;  %v517_v12 = vrot.slane %v508_v6, 4 }
 0x24e   : > { %v537_v15 = vrot.slane %v520_v11, 4  ;;  %v532_v20 = vsel %vm465_vm5, %v519_v4, %v508_v6 }
 0x24f   : > { %v513_v18 = vrot.slane %v496_v9, 4  ;;  %v516_v19 = vsel %vm465_vm5, 0.0, %v515_v10  ;;  %v518_v22 = vsel %vm465_vm5, 0.0, %v517_v12  ;;  %v521_v25 = vsel %vm465_vm5, %v515_v10, %v496_v9 }
 0x250   : > { %v526_v28 = vrot.slane %v516_v19, 4  ;;  %v536_v29 = vperm.slane %v532_v20, %v2001_v42  ;;  %v538_v33 = vsel %vm465_vm5, %v537_v15, %v518_v22  ;;  %v525_v39 = vperm.slane %v521_v25, %v2001_v42 }
 0x251   : > { %v514_v32 = vsel %vm465_vm5, 0.0, %v513_v18  ;;  %v542_v47 = vperm.slane %v538_v33, %v2001_v42 }
 0x252   : > { %v527_v46 = vsel %vm465_vm5, %v526_v28, %v514_v32  ;;  %v557_v51 = vrot.slane %v536_v29, 4  ;;  %v545_v58 = vrot.slane %v525_v39, 4 }
 0x253   : > { %v531_v57 = vperm.slane %v527_v46, %v2001_v42 }
 0x254   : > { %v558_v1 = vsel %vm465_vm5, %v542_v47, %v557_v51 }
 0x255   : > { %v543_v10 = vrot.slane %v531_v57, 4 }
 0x297   : > { %v580_v62 = vpop.permute.xlu2 %579 }
 0x298   : > { %v587_v8 = vrot.slane %v580_v62, 4  ;;  %v590_v13 = vsel %vm465_vm5, %v580_v62, %v589_v7 }
 0x299   : > { %v598_v17 = vperm.slane %v590_v13, %v2001_v42 }
 0x29a   : > { %v588_v16 = vsel %vm465_vm5, %v587_v8, %v576_v2  ;;  %v555_v2 = vrot.slane %v542_v47, 4 }
 0x29b   : > { %v594_v23 = vperm.slane %v588_v16, %v2001_v42  ;;  %v625_v30 = vrot.slane %v598_v17, 4  ;;  %v566_v16 = vperm.slane %v558_v1, %v2017_v56  ;;  %v1525_v1 = vpack.i.bf16 %v1994_v37, %v1985_v35 }
 0x29d   : > { %v613_v40 = vrot.slane %v594_v23, 4 }
 0x29f   : > { %v578_v14 = vpop.permute.xlu2 %577 }
 0x2a0   : > { %v601_v21 = vrot.slane %v578_v14, 4 }
 0x2b7   : > { %v582_v24 = vpop.permute.xlu1 %581 }
 0x2b8   : > { %v599_v26 = vrot.slane %v582_v24, 4  ;;  %v602_v27 = vsel %vm465_vm5, %v582_v24, %v601_v21  ;;  %v544_v24 = vsel %vm465_vm5, %v543_v10, %v525_v39 }
 0x2b9   : > { %v610_v31 = vperm.slane %v602_v27, %v2001_v42  ;;  %v550_v39 = vperm.slane %v544_v24, %v2017_v56 }
 0x2ba   : > { %v600_v34 = vsel %vm465_vm5, %v599_v26, %v578_v14 }
 0x2bb   : > { %v606_v41 = vperm.slane %v600_v34, %v2001_v42  ;;  %v623_v43 = vrot.slane %v610_v31, 4  ;;  %v626_v44 = vsel %vm465_vm5, %v610_v31, %v625_v30  ;;  %v571_v34 = vrot.slane %v566_v16, 4 }
 0x2bc   : > { %v634_v45 = vperm.slane %v626_v44, %v2017_v56 }
 0x2bd   : > { %v611_v48 = vrot.slane %v606_v41, 4  ;;  %v614_v49 = vsel %vm465_vm5, %v606_v41, %v613_v40  ;;  %v624_v50 = vsel %vm465_vm5, %v623_v43, %v598_v17  ;;  %v556_v17 = vsel %vm465_vm5, %v555_v2, %v536_v29 }
 0x2be   : > { %v622_v52 = vperm.slane %v614_v49, %v2017_v56  ;;  %v630_v53 = vperm.slane %v624_v50, %v2017_v56  ;;  %v641_v54 = vrot.slane %v634_v45, 4  ;;  %v562_v28 = vperm.slane %v556_v17, %v2017_v56 }
 0x2bf   : > { %v612_v55 = vsel %vm465_vm5, %v611_v48, %v594_v23  ;;  %v546_v23 = vsel %vm465_vm5, %v531_v57, %v545_v58  ;;  %v569_v50 = vrot.slane %v550_v39, 4  ;;  %v1530_v2 = vpack.i.bf16 %v1996_v38, %v1991_v36 }
 0x2c0   : > { %v618_v59 = vperm.slane %v612_v55, %v2017_v56  ;;  %v637_v60 = vrot.slane %v622_v52, 4  ;;  %v639_v61 = vrot.slane %v630_v53, 4  ;;  %v642_v62 = vsel %vm465_vm5, 0.0, %v641_v54 }
 0x2c1   : > { %v654_v63 = vsel %vm465_vm5, %v641_v54, %v630_v53  ;;  %v659_v0 = vrot.slane %v642_v62, 4  ;;  %v554_v33 = vperm.slane %v546_v23, %v2017_v56  ;;  %v567_v45 = vrot.slane %v562_v28, 4 }
 0x2c2   : > { %v638_v3 = vsel %vm465_vm5, 0.0, %v637_v60  ;;  %v640_v4 = vsel %vm465_vm5, 0.0, %v639_v61  ;;  %v658_v5 = vperm.slane %v654_v63, %v2001_v42  ;;  %v635_v6 = vrot.slane %v618_v59, 4 }
 0x2c3   : > { %v648_v7 = vrot.slane %v638_v3, 4  ;;  %v643_v8 = vsel %vm465_vm5, %v637_v60, %v618_v59  ;;  %v660_v9 = vsel %vm465_vm5, %v659_v0, %v640_v4  ;;  %v572_v49 = vsel %vm465_vm5, %v571_v34, %v554_v33 }
 0x2c4   : > { %v636_v11 = vsel %vm465_vm5, 0.0, %v635_v6  ;;  %v647_v12 = vperm.slane %v643_v8, %v2001_v42  ;;  %v664_v13 = vperm.slane %v660_v9, %v2001_v42  ;;  %v679_v14 = vrot.slane %v658_v5, 4 }
 0x2c5   : > { %v649_v15 = vsel %vm465_vm5, %v648_v7, %v636_v11  ;;  %v568_v52 = vsel %vm465_vm5, %v567_v45, %v550_v39  ;;  %v570_v53 = vsel %vm465_vm5, %v562_v28, %v569_v50  ;;  %v573_v54 = vrot.slane %v554_v33, 4 }
 0x2c6   : > { %v653_v18 = vperm.slane %v649_v15, %v2001_v42  ;;  %v667_v19 = vrot.slane %v647_v12, 4  ;;  %v680_v20 = vsel %vm465_vm5, %v664_v13, %v679_v14  ;;  %v677_v21 = vrot.slane %v664_v13, 4 }
 0x2c7   : > { %v688_v22 = vperm.slane %v680_v20, %v2017_v56  ;;  %v574_v55 = vsel %vm465_vm5, %v566_v16, %v573_v54 }
 0x2c8   : > { %v668_v25 = vsel %vm465_vm5, %v653_v18, %v667_v19  ;;  %v665_v26 = vrot.slane %v653_v18, 4  ;;  %v678_v27 = vsel %vm465_vm5, %v677_v21, %v658_v5 }
 0x2c9   : > { %v676_v29 = vperm.slane %v668_v25, %v2017_v56  ;;  %v693_v30 = vrot.slane %v688_v22, 4  ;;  %v684_v31 = vperm.slane %v678_v27, %v2017_v56 }
 0x2ca   : > { %v666_v32 = vsel %vm465_vm5, %v665_v26, %v647_v12 }
 0x2cb   : > { %v694_v40 = vsel %vm465_vm5, %v693_v30, %v676_v29  ;;  %v672_v41 = vperm.slane %v666_v32, %v2017_v56  ;;  %v689_v43 = vrot.slane %v684_v31, 4  ;;  %v695_v44 = vrot.slane %v676_v29, 4 }
 0x2cc   : > { %1415 = vmatpush.xpose.msk.msra.mxu3 %vm819_vm6, %v694_v40 }
 0x2cd   : > { %v690_v46 = vsel %vm465_vm5, %v689_v43, %v672_v41  ;;  %v696_v47 = vsel %vm465_vm5, %v688_v22, %v695_v44  ;;  %v691_v48 = vrot.slane %v672_v41, 4 }
 0x2ce   : > { %1411 = vmatpush.xpose.msk.msra.mxu1 %vm819_vm6, %v690_v46 }
 0x2cf   : > { %1416 = vmatmul.msk.f32.vlgmr.msra.gmra.mxu3 %vm819_vm6, %v572_v49  ;;  %v692_v51 = vsel %vm465_vm5, %v684_v31, %v691_v48 }
 0x2d0   : > { %1413 = vmatpush.xpose.msk.msra.mxu2 %vm819_vm6, %v692_v51 }
 0x2d1   : > { %1412 = vmatmul.msk.f32.vlgmr.msra.gmra.mxu1 %vm819_vm6, %v568_v52 }
 0x2d2   : > { %1417 = vmatpush.xpose.msk.msrb.mxu1 %vm819_vm6, %v696_v47 }
 0x2d3   : > { %1414 = vmatmul.msk.f32.vlgmr.msra.gmra.mxu2 %vm819_vm6, %v570_v53 }
 0x2d9   : > { %1418 = vmatmul.msk.f32.vlgmr.msrb.gmra.mxu1 %vm819_vm6, %v574_v55 }
 0x34e   : > { %v843_v57 = vpop.f32.mrf.mxu1 }
 0x34f   : > { %v924_v58 = vsel %vm819_vm6, %v843_v57, -inf }
 0x350   : > { %925 = vmax.xlane.f32.xlu1 %v924_v58 }
 0x352   : > { %v895_v59 = vpop.f32.mrf.mxu3 }
 0x353   : > { %v930_v60 = vsel %vm819_vm6, %v895_v59, -inf }
 0x354   : > { %931 = vmax.xlane.f32.xlu0 %v930_v60 }
 0x356   : > { %v869_v61 = vpop.f32.mrf.mxu2  ;;  %v921_v63 = vpop.f32.mrf.mxu1 }
 0x357   : > { %v927_v62 = vsel %vm819_vm6, %v869_v61, -inf  ;;  %v933_v0 = vsel %vm819_vm6, %v921_v63, -inf }
 0x358   : > { %928 = vmax.xlane.f32.xlu2 %v927_v62 }
 0x360   : > { %934 = vmax.xlane.f32.xlu2 %v933_v0 }
 0x369   : > { %1526 = vrot.lane.b32.xlu1 %v1525_v1, %s1799_s22 }
 0x378   : > { %1531 = vrot.lane.b32.xlu2 %v1530_v2, %s1799_s22  ;;  %s1695_s22 = scalar_lea.hbm %s1694_s25, 8 }
 0x379   : > { %p1696_p1 = scmp.ne.s32.totalorder %s1694_s25, %s1695_s22  ;;  %p1701_p10 = scmp.lt.s32.totalorder %s1699_s9, %s1695_s22 }
 0x37b   : > { %p1697_p4 = pnand %p1696_p1, %p1930_p3  ;;  %p1702_p2 = por %p1701_p10, %p1700_p9 }
 0x37d   : > { %p1698_p8 = pneg %p1697_p4 }
 0x37f   : > { %p1703_p11 = pnand %p1702_p2, %p1698_p8 }
 0x3c3   : > { %v926_v3 = vpop.xlane.xlu1 %925 }
 0x3c4   : > { %v936_v4 = vsub.f32 %v843_v57, %v926_v3 }
 0x3c6   : > { %v940_v5 = vmul.f32 1.442695, %v936_v4 }
 0x3c7   : > { %v932_v6 = vpop.xlane.xlu0 %931 }
 0x3c8   : > { %1543 = vpow2.f32 %v940_v5  ;;  %v938_v7 = vsub.f32 %v895_v59, %v932_v6 }
 0x3ca   : > { %v944_v8 = vmul.f32 1.442695, %v938_v7 }
 0x3cb   : > { %v929_v9 = vpop.xlane.xlu2 %928 }
 0x3cc   : > { %1545 = vpow2.f32 %v944_v8  ;;  %v937_v10 = vsub.f32 %v869_v61, %v929_v9 }
 0x3ce   : > { %v2108_v11 = vpop.eup %1543  ;;  %v942_v12 = vmul.f32 1.442695, %v937_v10 }
 0x3cf   : > { %v948_v35 = vsel %vm819_vm6, %v2108_v11, 0.0 }
 0x3d0   : > { %1547 = vpow2.f32 %v942_v12  ;;  %949 = vadd.xlane.f32.xlu0 %v948_v35 }
 0x3d2   : > { %v2112_v36 = vpop.eup %1545 }
 0x3d3   : > { %v935_v37 = vpop.xlane.xlu2 %934  ;;  %v954_v38 = vsel %vm819_vm6, %v2112_v36, 0.0 }
 0x3d4   : > { %v939_v13 = vsub.f32 %v921_v63, %v935_v37  ;;  %955 = vadd.xlane.f32.xlu1 %v954_v38 }
 0x3d6   : > { %v2116_v14 = vpop.eup %1547  ;;  %v946_v15 = vmul.f32 1.442695, %v939_v13 }
 0x3d7   : > { %v951_v16 = vsel %vm819_vm6, %v2116_v14, 0.0 }
 0x3d8   : > { %1549 = vpow2.f32 %v946_v15  ;;  %952 = vadd.xlane.f32.xlu0 %v951_v16 }
 0x3db   : > { %v1527_v17 = vpop.permute.xlu1 %1526  ;;  %v1532_v18 = vpop.permute.xlu2 %1531 }
 0x3dc   : > { %v1529_v19 = vunpack.i.h.bf16 %v1527_v17  ;;  %v1528_v20 = vunpack.i.l.bf16 %v1527_v17  ;;  %v1534_v21 = vunpack.i.h.bf16 %v1532_v18  ;;  %v1533_v22 = vunpack.i.l.bf16 %v1532_v18 }
 0x3de   : > { %v2120_v23 = vpop.eup %1549  ;;  %v723_v24 = vrot.slane %v1529_v19, 4  ;;  %v711_v25 = vrot.slane %v1528_v20, 4  ;;  %v721_v26 = vrot.slane %v1534_v21, 4  ;;  %v709_v27 = vrot.slane %v1533_v22, 4 }
 0x3df   : > { %v957_v28 = vsel %vm819_vm6, %v2120_v23, 0.0 }
 0x3e0   : > { %v722_v29 = vsel %vm465_vm5, %v721_v26, %v1529_v19  ;;  %v724_v30 = vsel %vm465_vm5, %v1534_v21, %v723_v24  ;;  %v710_v31 = vsel %vm465_vm5, %v709_v27, %v1528_v20  ;;  %v712_v32 = vsel %vm465_vm5, %v1533_v22, %v711_v25  ;;  %958 = vadd.xlane.f32.xlu0 %v957_v28 }
 0x3e1   : > { %v728_v33 = vperm.slane %v722_v29, %v2001_v42  ;;  %v732_v34 = vperm.slane %v724_v30, %v2001_v42  ;;  %v716_v39 = vperm.slane %v710_v31, %v2001_v42  ;;  %v720_v40 = vperm.slane %v712_v32, %v2001_v42 }
 0x3e3   : > { %v733_v41 = vrot.slane %v728_v33, 4  ;;  %v745_v43 = vrot.slane %v732_v34, 4  ;;  %v735_v44 = vrot.slane %v716_v39, 4  ;;  %v747_v45 = vrot.slane %v720_v40, 4 }
 0x3e5   : > { %v734_v46 = vsel %vm465_vm5, %v733_v41, %v716_v39  ;;  %v736_v47 = vsel %vm465_vm5, %v728_v33, %v735_v44  ;;  %v746_v48 = vsel %vm465_vm5, %v745_v43, %v720_v40  ;;  %v748_v49 = vsel %vm465_vm5, %v732_v34, %v747_v45 }
 0x3e6   : > { %v740_v50 = vperm.slane %v734_v46, %v2017_v56  ;;  %v744_v51 = vperm.slane %v736_v47, %v2017_v56  ;;  %v752_v52 = vperm.slane %v746_v48, %v2017_v56  ;;  %v756_v53 = vperm.slane %v748_v49, %v2017_v56 }
 0x3e8   : > { %v759_v54 = vrot.slane %v744_v51, 4  ;;  %v761_v55 = vrot.slane %v752_v52, 4  ;;  %v763_v57 = vrot.slane %v756_v53, 4  ;;  %v757_v58 = vrot.slane %v740_v50, 4 }
 0x3ea   : > { %v764_v59 = vsel %vm465_vm5, 0.0, %v763_v57  ;;  %v760_v60 = vsel %vm465_vm5, 0.0, %v759_v54  ;;  %v765_v62 = vsel %vm465_vm5, %v759_v54, %v740_v50  ;;  %v776_v0 = vsel %vm465_vm5, %v763_v57, %v752_v52 }
 0x3eb   : > { %v781_v61 = vrot.slane %v764_v59, 4  ;;  %v770_v63 = vrot.slane %v760_v60, 4  ;;  %v758_v1 = vsel %vm465_vm5, 0.0, %v757_v58  ;;  %v762_v2 = vsel %vm465_vm5, 0.0, %v761_v55 }
 0x3ec   : > { %v769_v3 = vperm.slane %v765_v62, %v2001_v42  ;;  %v780_v4 = vperm.slane %v776_v0, %v2001_v42 }
 0x3ed   : > { %v771_v5 = vsel %vm465_vm5, %v770_v63, %v758_v1  ;;  %v782_v6 = vsel %vm465_vm5, %v781_v61, %v762_v2 }
 0x3ee   : > { %v775_v7 = vperm.slane %v771_v5, %v2001_v42  ;;  %v786_v8 = vperm.slane %v782_v6, %v2001_v42  ;;  %v789_v9 = vrot.slane %v769_v3, 4  ;;  %v801_v10 = vrot.slane %v780_v4, 4 }
 0x3f0   : > { %v790_v12 = vsel %vm465_vm5, %v775_v7, %v789_v9  ;;  %v802_v35 = vsel %vm465_vm5, %v786_v8, %v801_v10  ;;  %v787_v37 = vrot.slane %v775_v7, 4  ;;  %v799_v38 = vrot.slane %v786_v8, 4 }
 0x3f1   : > { %v798_v13 = vperm.slane %v790_v12, %v2017_v56  ;;  %v810_v15 = vperm.slane %v802_v35, %v2017_v56 }
 0x3f2   : > { %v788_v16 = vsel %vm465_vm5, %v787_v37, %v769_v3  ;;  %v800_v17 = vsel %vm465_vm5, %v799_v38, %v780_v4 }
 0x3f3   : > { %v815_v18 = vrot.slane %v810_v15, 4  ;;  %v817_v19 = vrot.slane %v798_v13, 4  ;;  %v794_v20 = vperm.slane %v788_v16, %v2017_v56  ;;  %v806_v21 = vperm.slane %v800_v17, %v2017_v56 }
 0x3f5   : > { %v816_v22 = vsel %vm465_vm5, %v815_v18, %v798_v13  ;;  %v818_v24 = vsel %vm465_vm5, %v810_v15, %v817_v19  ;;  %v811_v25 = vrot.slane %v806_v21, 4  ;;  %v813_v26 = vrot.slane %v794_v20, 4 }
 0x3f6   : > { %1032 = vmatpush.msrb.mxu0 %v816_v22  ;;  %1055 = vmatpush.msra.mxu1 %v818_v24 }
 0x3f7   : > { %v812_v27 = vsel %vm465_vm5, %v811_v25, %v794_v20  ;;  %v814_v28 = vsel %vm465_vm5, %v806_v21, %v813_v26 }
 0x3f8   : > { %986 = vmatpush.msrb.mxu2 %v812_v27  ;;  %1009 = vmatpush.msrb.mxu3 %v814_v28 }
 0x443   : > { %v950_v29 = vpop.xlane.xlu0 %949 }
 0x444   : > { %1551 = vrcp.f32 %v950_v29 }
 0x447   : > { %v956_v30 = vpop.xlane.xlu1 %955 }
 0x448   : > { %1553 = vrcp.f32 %v956_v30 }
 0x44a   : > { %v1552_v31 = vpop.eup %1551 }
 0x44b   : > { %v953_v32 = vpop.xlane.xlu0 %952  ;;  %v964_v33 = vmul.f32 %v1552_v31, %v2108_v11 }
 0x44c   : > { %1555 = vrcp.f32 %v953_v32 }
 0x44d   : > { %1419 = vmatmul.msk.f32.vlgmr.msrb.gmra.mxu2 %vm819_vm6, %v964_v33  ;;  %v1219_v11 = vsel %vm819_vm6, %v964_v33, 0.0 }
 0x44e   : > { %v1554_v34 = vpop.eup %1553 }
 0x44f   : > { %v966_v39 = vmul.f32 %v1554_v34, %v2112_v36 }
 0x451   : > { %1421 = vmatmul.msk.f32.vlgmr.msrb.gmra.mxu0 %vm819_vm6, %v966_v39  ;;  %v1222_v47 = vsel %vm819_vm6, %v966_v39, 0.0 }
 0x452   : > { %v1556_v40 = vpop.eup %1555 }
 0x453   : > { %v959_v41 = vpop.xlane.xlu0 %958  ;;  %v965_v43 = vmul.f32 %v1556_v40, %v2116_v14 }
 0x454   : > { %1557 = vrcp.f32 %v959_v41 }
 0x455   : > { %1420 = vmatmul.msk.f32.vlgmr.msrb.gmra.mxu3 %vm819_vm6, %v965_v43  ;;  %v1220_v44 = vsel %vm819_vm6, %v965_v43, 0.0 }
 0x456   : > { %v1221_v45 = vadd.f32 %v1220_v44, %v1219_v11 }
 0x458   : > { %v1223_v48 = vadd.f32 %v1222_v47, %v1221_v45 }
 0x45a   : > { %v1558_v46 = vpop.eup %1557 }
 0x45b   : > { %v967_v36 = vmul.f32 %v1558_v46, %v2120_v23 }
 0x45d   : > { %v1224_v49 = vsel %vm819_vm6, %v967_v36, 0.0  ;;  %1422 = vmatmul.msk.f32.vlgmr.msra.gmra.mxu1 %vm819_vm6, %v967_v36 }
 0x45e   : > { %v1225_v50 = vadd.f32 %v1224_v49, %v1223_v48 }
 0x460   : > { %v1226_v14 = vmul.f32 0.25, %v1225_v50 }
 0x462   : > { %1227 = vst.msk [vmem:[%s381_s26] sm:$0xff] %vm819_vm6, %v1226_v14 }
 0x4ce   : > { %v1034_v51 = vpop.f32.mrf.mxu0 }
 0x4cf   : > { %v1060_v54 = vrot.slane %v1034_v51, 4 }
 0x4d0   : > { %v988_v52 = vpop.f32.mrf.mxu2 }
 0x4d1   : > { %v1062_v53 = vrot.slane %v988_v52, 4  ;;  %v1061_v57 = vsel %vm465_vm5, %v1060_v54, %v988_v52  ;;  %v1190_v54 = vld [vmem:[#allocation8 + $0x18] sm:$0xff] }
 0x4d2   : > { %v1067_v60 = vperm.slane %v1061_v57, %v2001_v42  ;;  %1210 = vmatpush.msra.mxu2 %v1190_v54  ;;  %v1187_v57 = vld [vmem:[#allocation8] sm:$0xff] }
 0x4d3   : > { %v1063_v55 = vsel %vm465_vm5, %v1034_v51, %v1062_v53 }
 0x4d4   : > { %v1071_v23 = vperm.slane %v1063_v55, %v2001_v42  ;;  %v1086_v3 = vrot.slane %v1067_v60, 4  ;;  %v1189_v55 = vld [vmem:[#allocation8 + $0x10] sm:$0xff] }
 0x4d5   : > { %1211 = vmatpush.msra.mxu2 %v1189_v55 }
 0x4d6   : > { %v1098_v0 = vrot.slane %v1071_v23, 4 }
 0x4d8   : > { %v1011_v58 = vpop.f32.mrf.mxu3 }
 0x4d9   : > { %v1074_v59 = vrot.slane %v1011_v58, 4 }
 0x4da   : > { %v1057_v61 = vpop.f32.mrf.mxu1 }
 0x4db   : > { %v1072_v62 = vrot.slane %v1057_v61, 4  ;;  %v1075_v63 = vsel %vm465_vm5, %v1057_v61, %v1074_v59 }
 0x4dc   : > { %v1083_v1 = vperm.slane %v1075_v63, %v2001_v42 }
 0x4dd   : > { %v1073_v2 = vsel %vm465_vm5, %v1072_v62, %v1011_v58 }
 0x4de   : > { %v1079_v4 = vperm.slane %v1073_v2, %v2001_v42  ;;  %v1096_v5 = vrot.slane %v1083_v1, 4  ;;  %v1099_v6 = vsel %vm465_vm5, %v1083_v1, %v1098_v0 }
 0x4df   : > { %v1107_v7 = vperm.slane %v1099_v6, %v2017_v56 }
 0x4e0   : > { %v1084_v8 = vrot.slane %v1079_v4, 4  ;;  %v1087_v9 = vsel %vm465_vm5, %v1079_v4, %v1086_v3  ;;  %v1097_v10 = vsel %vm465_vm5, %v1096_v5, %v1071_v23 }
 0x4e1   : > { %v1095_v12 = vperm.slane %v1087_v9, %v2017_v56  ;;  %v1103_v35 = vperm.slane %v1097_v10, %v2017_v56  ;;  %v1114_v37 = vrot.slane %v1107_v7, 4 }
 0x4e2   : > { %v1085_v38 = vsel %vm465_vm5, %v1084_v8, %v1067_v60 }
 0x4e3   : > { %v1091_v13 = vperm.slane %v1085_v38, %v2017_v56  ;;  %v1110_v15 = vrot.slane %v1095_v12, 4  ;;  %v1112_v16 = vrot.slane %v1103_v35, 4  ;;  %v1115_v17 = vsel %vm465_vm5, 0.0, %v1114_v37 }
 0x4e4   : > { %v1127_v18 = vsel %vm465_vm5, %v1114_v37, %v1103_v35  ;;  %v1132_v19 = vrot.slane %v1115_v17, 4 }
 0x4e5   : > { %v1108_v20 = vrot.slane %v1091_v13, 4  ;;  %v1111_v21 = vsel %vm465_vm5, 0.0, %v1110_v15  ;;  %v1113_v22 = vsel %vm465_vm5, 0.0, %v1112_v16  ;;  %v1131_v24 = vperm.slane %v1127_v18, %v2001_v42 }
 0x4e6   : > { %v1121_v25 = vrot.slane %v1111_v21, 4  ;;  %v1116_v26 = vsel %vm465_vm5, %v1110_v15, %v1091_v13  ;;  %v1133_v27 = vsel %vm465_vm5, %v1132_v19, %v1113_v22 }
 0x4e7   : > { %v1109_v28 = vsel %vm465_vm5, 0.0, %v1108_v20  ;;  %v1120_v29 = vperm.slane %v1116_v26, %v2001_v42  ;;  %v1137_v30 = vperm.slane %v1133_v27, %v2001_v42  ;;  %v1152_v31 = vrot.slane %v1131_v24, 4 }
 0x4e8   : > { %v1122_v32 = vsel %vm465_vm5, %v1121_v25, %v1109_v28 }
 0x4e9   : > { %v1126_v33 = vperm.slane %v1122_v32, %v2001_v42  ;;  %v1140_v34 = vrot.slane %v1120_v29, 4  ;;  %v1153_v39 = vsel %vm465_vm5, %v1137_v30, %v1152_v31  ;;  %v1150_v40 = vrot.slane %v1137_v30, 4 }
 0x4ea   : > { %v1161_v41 = vperm.slane %v1153_v39, %v2017_v56 }
 0x4eb   : > { %v1141_v43 = vsel %vm465_vm5, %v1126_v33, %v1140_v34  ;;  %v1138_v44 = vrot.slane %v1126_v33, 4  ;;  %v1151_v11 = vsel %vm465_vm5, %v1150_v40, %v1131_v24 }
 0x4ec   : > { %v1149_v45 = vperm.slane %v1141_v43, %v2017_v56  ;;  %v1166_v46 = vrot.slane %v1161_v41, 4  ;;  %v1157_v47 = vperm.slane %v1151_v11, %v2017_v56 }
 0x4ed   : > { %v1139_v36 = vsel %vm465_vm5, %v1138_v44, %v1120_v29 }
 0x4ee   : > { %v1167_v42 = vsel %vm465_vm5, %v1166_v46, %v1149_v45  ;;  %v1145_v48 = vperm.slane %v1139_v36, %v2017_v56  ;;  %v1162_v49 = vrot.slane %v1157_v47, 4  ;;  %v1168_v52 = vrot.slane %v1149_v45, 4  ;;  %v1188_v56 = vld [vmem:[#allocation8 + $0x8] sm:$0xff] }
 0x4ef   : > { %1175 = vrot.lane.b32.xlu0 %v1167_v42, %s1800_s13  ;;  %1212 = vmatpush.msra.mxu2 %v1188_v56 }
 0x4f0   : > { %v1164_v50 = vrot.slane %v1145_v48, 4  ;;  %v1163_v14 = vsel %vm465_vm5, %v1162_v49, %v1145_v48  ;;  %v1169_v53 = vsel %vm465_vm5, %v1161_v41, %v1168_v52 }
 0x4f1   : > { %1213 = vmatpush.msra.mxu2 %v1187_v57 }
 0x4f2   : > { %v1165_v51 = vsel %vm465_vm5, %v1157_v47, %v1164_v50 }
 0x4f3   : > { %1171 = vrot.lane.b32.xlu2 %v1165_v51, %s1801_s1 }
 0x4fb   : > { %1179 = vrot.lane.b32.xlu2 %v1169_v53, %s1802_s3 }
 0x54d   : > { %v1172_v23 = vpop.permute.xlu2 %1171 }
 0x54e   : > { %v1182_v58 = vsel %vm819_vm6, %v1163_v14, %v1172_v23 }
 0x555   : > { %v1180_v60 = vpop.permute.xlu2 %1179 }
 0x561   : > { %v1176_v59 = vpop.permute.xlu0 %1175 }
 0x562   : > { %v1184_v61 = vsel %vm1183_vm7, %v1182_v58, %v1176_v59 }
 0x563   : > { %v1186_v62 = vsel %vm1185_vm8, %v1184_v61, %v1180_v60 }
 0x564   : > { %1423 = vmatmul.msk.f32.vlgmr.msra.gmra.mxu2 %vm383_vm0, %v1186_v62 }
 0x565   : > { %1706 = shalt.err (!%p1703_p11)
}
 0x566   : > { %1445 = dma.vmem_to_hbm [thread:$0]  (%p1930_p3), %s1261_s18, 128, %s1263_s20, %s1234_s10   ;;  %v1538_v63 = vld [vmem:[%s2282_s6] ss:$0 sm:$0xff] }
 0x567   : > { %s1244_s19 = scalar_lea.hbm %s2283_s7, %s1426_s11  ;;  %s374_s3 = scalar_lea.vmem [#allocation10], %s1960_s17 }
 0x568   : > { %s1246_s25 = sshll.u32 %s374_s3, 4  ;;  %s1248_s22 = sshll.u32 %s1244_s19, 4  ;;  %s1247_s25 = int_to_ptr.vmem [resolvable:$true] %s1246_s25  ;;  %s1249_s22 = int_to_ptr.hbm [resolvable:$true] %s1248_s22 }
 0x569   : > { %s1229_s9 = scalar_lea.sflag [#allocation4], %s1957_s24  ;;  %s1721_s18 = sshra.s32 %s1249_s22, 4  ;;  %s1722_s18 = int_to_ptr.hbm [resolvable:$true] %s1721_s18 }
 0x56a   : > { %s1723_s20 = scalar_lea.hbm %s1722_s18, 8  ;;  %s1727_s17 = scalar_lea.hbm %s2283_s7, 16 }
 0x56b   : > { %p1724_p12 = scmp.ne.s32.totalorder %s1722_s18, %s1723_s20  ;;  %p1728_p5 = scmp.lt.s32.totalorder %s1722_s18, %s2283_s7 }
 0x56c   : > { %p1729_p7 = scmp.lt.s32.totalorder %s1727_s17, %s1723_s20 }
 0x56d   : > { %p1725_p13 = pnand %p1724_p12, %p1930_p3 }
 0x56e   : > { %p1730_p1 = por %p1729_p7, %p1728_p5 }
 0x56f   : > { %p1726_p0 = pneg %p1725_p13 }
 0x571   : > { %p1731_p4 = pnand %p1730_p1, %p1726_p0 }
 0x5e7   : > { %v1215_v0 = vpop.f32.mrf.mxu2 }
 0x5e8   : > { %v1216_v1 = vadd.f32 %v1538_v63, %v1215_v0 }
 0x5ea   : > { %1218 = vst.msk [vmem:[%s374_s3] sm:$0xff] %vm383_vm0, %v1216_v1 }
 0x5eb   : > { %1734 = shalt.err (!%p1731_p4)
}
 0x5ec   : > { %1444 = dma.vmem_to_hbm [thread:$0]  (%p1930_p3), %s1247_s25, 128, %s1249_s22, %s1229_s9  }
 0x5ed PF: > { %s1274_s24 = sand.u32 1, %s1773_s27   ;;  %p2295_p8 = scmp.ge.s32.totalorder %s1785_s30, 2 }
 0x5ee   : > { %s1275_s14 = scalar_lea.sflag [#allocation4], %s1274_s24 }
 0x5ef   : > { %p1463_p9 = pnand %p2295_p8, %p1883_p6 }
 0x5f1   : > { %p1464_p10 = pneg %p1463_p9 }
 0x5f3   : > { %1764 = dma.done.wait (%p1464_p10), %s1275_s14, 128  }
 0x5f4   : > { %1766 = vsyncadd (%p1464_p10), %s1275_s14, 4294967168  ;;  %s1285_s19 = scalar_lea.sflag [#allocation12], %s1274_s24 }
 0x5f5   : > { %1768 = dma.done.wait (%p1464_p10), %s1285_s19, 128  }
 0x5f6   : > { %1770 = vsyncadd (%p1464_p10), %s1285_s19, 4294967168  ;;  %p27_p3 = scmp.ge.s32.totalorder %s1917_s15, 4   ;;  %s2296_s27 = smov %s1777_s28 }
 0x5f7   : > { %s2297_s28 = smov %s1781_s29  ;;  %s2298_s29 = smov %s1926_s21 }
 0x5f8   : > { %s2299_s30 = smov %s1917_s15  ;;  %29 = sbr.rel (!%p27_p3) target bundleno = 12 (0xc), region = 122 }
 0x5fd   :  { %1291 = vsyncpa [#allocation3], 1 }
 0x5fe   :  { %1293 = vsyncpa [#allocation3 + $0x1], 1 }
 0x5ff   :  { %1294 = vsyncpa [#allocation6], 1 }
 0x600   :  { %1295 = vsyncpa [#allocation9], 1 }
 0x601   :  { %1296 = vsyncpa [#allocation4], 1 }
 0x602   :  { %1298 = vsyncpa [#allocation4 + $0x1], 1 }
 0x603   :  { %1299 = vsyncpa [#allocation12], 1 }
 0x604   :  { %1301 = vsyncpa [#allocation12 + $0x1], 1 }

</bundles_post_ra>
